<compile_context>
chip_gen: v5e
topology: v5e:2x2
jax: 0.10.0
libtpu: 0.0.40
codegen_flags: <defaults>
</compile_context>

<pallas_src>
import functools

import jax
import jax.numpy as jnp
from jax.experimental import pallas as pl
from jax.experimental.pallas import tpu as pltpu


def _centrality_kernel(deg_ref, x_ref, zin3_ref, zout3_ref, o_ref, *,
                       max_in: int, max_out: int):
    """One node tile: out = x + z_in[clamp(in_deg)] + z_out[clamp(out_deg)]."""
    tn = x_ref.shape[0]

    deg = deg_ref[...]                                    # (TN, 2) int32
    in_deg = jnp.minimum(deg[:, 0:1], max_in - 1)         # decrease_to_max_value
    out_deg = jnp.minimum(deg[:, 1:2], max_out - 1)

    # One-hot over the 3x-stacked bf16-digit tables: lane c selects stacked
    # row c, and (c % K) == deg is true for c = deg, deg+K, deg+2K, i.e. the
    # hi/mid/lo digits of table row `deg`.  0/1 are exact in bf16, so the two
    # MXU matmuls below reconstruct the f32 table rows exactly.
    in_lane = jax.lax.broadcasted_iota(jnp.int32, (tn, 3 * max_in), 1)
    out_lane = jax.lax.broadcasted_iota(jnp.int32, (tn, 3 * max_out), 1)
    oh_in = (in_lane % max_in == in_deg).astype(jnp.bfloat16)    # (TN, 3*Kin)
    oh_out = (out_lane % max_out == out_deg).astype(jnp.bfloat16)

    gathered = (
        jnp.dot(oh_in, zin3_ref[...], preferred_element_type=jnp.float32)
        + jnp.dot(oh_out, zout3_ref[...], preferred_element_type=jnp.float32)
    )                                                     # (TN, D) f32, exact

    o_ref[...] = (x_ref[...].astype(jnp.float32) + gathered).astype(o_ref.dtype)


def _split3_bf16(z):
    """Row-stack three bf16 'digits' whose sum reconstructs f32 `z` exactly."""
    z = z.astype(jnp.float32)
    hi = z.astype(jnp.bfloat16)
    r1 = z - hi.astype(jnp.float32)
    mid = r1.astype(jnp.bfloat16)
    lo = (r1 - mid.astype(jnp.float32)).astype(jnp.bfloat16)
    return jnp.concatenate([hi, mid, lo], axis=0)         # (3K, D) bf16


def _round_up(v, m):
    return ((v + m - 1) // m) * m


def centrality_encoding(x, edge_index, z_in, z_out, *, tile_nodes=None):
    """x: (N, D) float, edge_index: (2, E) int, z_in: (max_in, D), z_out: (max_out, D)."""
    n_nodes, hidden = x.shape
    max_in, max_out = z_in.shape[0], z_out.shape[0]
    edge_index = edge_index.astype(jnp.int32)

    # --- degrees via O(E) XLA scatter-add, merged into one (N, 2) input -----
    # TODO(synk): the degree histogram (data-dependent scatter over E edges)
    # stays in XLA; a dense Pallas equivalent would be O(N*E).
    in_deg = jnp.zeros((n_nodes,), jnp.int32).at[edge_index[1]].add(1)
    out_deg = jnp.zeros((n_nodes,), jnp.int32).at[edge_index[0]].add(1)
    deg = jnp.stack([in_deg, out_deg], axis=1)            # (N, 2) int32

    # --- exact-gather tables: 3-way bf16 digit split (tiny, done once) ------
    zin3 = _split3_bf16(z_in)                              # (3*max_in, D) bf16
    zout3 = _split3_bf16(z_out)                            # (3*max_out, D) bf16

    # --- generation-aware node tile & VMEM budget ----------------------------
    try:
        vmem_cap = int(pltpu.get_tpu_info().vmem_capacity_bytes)
    except Exception:                                      # fallback: v7x-conservative
        vmem_cap = 64 * 1024 * 1024

    x_item = jnp.dtype(x.dtype).itemsize
    d_alloc = _round_up(hidden, 128)                       # lane padding in VMEM
    # double-buffered streaming bytes per node row: x in + out + (N, 2) degrees
    per_row = 2 * (2 * d_alloc * x_item + 128 * 4)
    # grid-resident digit tables (constant index map -> never re-fetched, but
    # default pipelining still allocates two buffers; count both).
    table_bytes = 2 * 2 * 3 * (_round_up(max_in, 8) + _round_up(max_out, 8)) * d_alloc
    budget = max(vmem_cap // 2 - table_bytes, 1 << 20)     # <=32 MiB v7x, <=64 MiB v5e/v6e

    if tile_nodes is None:
        tn = min(2048, max(8, (budget // per_row) // 8 * 8))
    else:
        tn = max(8, (int(tile_nodes) // 8) * 8)
    # keep >= 2 grid steps when there is enough work (megacore sharding on v7x)
    tn = min(tn, max(_round_up(pl.cdiv(n_nodes, 2), 8), 8))

    grid = (pl.cdiv(n_nodes, tn),)
    vmem_limit = min(int(vmem_cap * 0.85), 100 * 1024 * 1024)

    kernel = functools.partial(_centrality_kernel, max_in=max_in, max_out=max_out)

    return pl.pallas_call(
        kernel,
        out_shape=jax.ShapeDtypeStruct((n_nodes, hidden), x.dtype),
        grid=grid,
        in_specs=[
            pl.BlockSpec((tn, 2), lambda i: (i, 0)),                # degrees tile
            pl.BlockSpec((tn, hidden), lambda i: (i, 0)),           # x tile
            pl.BlockSpec((3 * max_in, hidden), lambda i: (0, 0)),   # z_in digits (resident)
            pl.BlockSpec((3 * max_out, hidden), lambda i: (0, 0)),  # z_out digits (resident)
        ],
        out_specs=pl.BlockSpec((tn, hidden), lambda i: (i, 0)),
        compiler_params=pltpu.CompilerParams(
            dimension_semantics=("parallel",),
            vmem_limit_bytes=vmem_limit,
        ),
    )(deg, x, zin3, zout3)


def _reference(x, edge_index, z_in, z_out):
    n = x.shape[0]
    in_deg = jnp.minimum(
        jnp.zeros((n,), jnp.int32).at[edge_index[1]].add(1), z_in.shape[0] - 1)
    out_deg = jnp.minimum(
        jnp.zeros((n,), jnp.int32).at[edge_index[0]].add(1), z_out.shape[0] - 1)
    return x + z_in[in_deg] + z_out[out_deg]


if __name__ == "__main__":
    key = jax.random.PRNGKey(0)
    k_x, k_src, k_dst, k_zin, k_zout, k_x2, k_src2, k_dst2 = jax.random.split(key, 8)

    num_nodes = 8
    hidden_node_dim = 32
    num_edges = 16
    max_in_degree = 8
    max_out_degree = 8

    x = jax.random.normal(k_x, (num_nodes, hidden_node_dim), jnp.float32)
    src = jax.random.randint(k_src, (num_edges,), 0, num_nodes, jnp.int32)
    dst = jax.random.randint(k_dst, (num_edges,), 0, num_nodes, jnp.int32)
    edge_index = jnp.stack([src, dst], axis=0)             # (2, E)

    # deterministic "torch.randn"-style parameters
    z_in = jax.random.normal(k_zin, (max_in_degree, hidden_node_dim), jnp.float32)
    z_out = jax.random.normal(k_zout, (max_out_degree, hidden_node_dim), jnp.float32)

    out = jax.block_until_ready(centrality_encoding(x, edge_index, z_in, z_out))
    ref = _reference(x, edge_index, z_in, z_out)
    assert out.shape == ref.shape, "shape mismatch vs reference"
    assert jnp.allclose(out, ref, atol=1e-5, rtol=1e-5), "mismatch vs reference"

    # second case: N not a multiple of the node tile -> exercises the ragged
    # last block (the pad/slice-free path).
    n2, e2 = 10, 24
    x2 = jax.random.normal(k_x2, (n2, hidden_node_dim), jnp.float32)
    src2 = jax.random.randint(k_src2, (e2,), 0, n2, jnp.int32)
    dst2 = jax.random.randint(k_dst2, (e2,), 0, n2, jnp.int32)
    edge_index2 = jnp.stack([src2, dst2], axis=0)
    out2 = jax.block_until_ready(centrality_encoding(x2, edge_index2, z_in, z_out))
    ref2 = _reference(x2, edge_index2, z_in, z_out)
    assert out2.shape == ref2.shape, "ragged shape mismatch vs reference"
    assert jnp.allclose(out2, ref2, atol=1e-5, rtol=1e-5), "ragged mismatch vs reference"

    print("KERNEL_OK")
</pallas_src>

<mosaic_0001>
module attributes {stable_mosaic.version = 11 : i64} {
  func.func @_centrality_kernel(%arg0: i32, %arg1: memref<8x2xi32, #tpu.memory_space<vmem>>, %arg2: memref<8x32xf32, #tpu.memory_space<vmem>>, %arg3: memref<24x32xbf16, #tpu.memory_space<vmem>>, %arg4: memref<24x32xbf16, #tpu.memory_space<vmem>>, %arg5: memref<8x32xf32, #tpu.memory_space<vmem>>) attributes {dimension_semantics = [#tpu.dimension_semantics<parallel>], iteration_bounds = array<i64: 1>, scalar_prefetch = 0 : i64, scratch_operands = 0 : i64, tpu.core_type = #tpu.core_type<tc>, window_params = [{transform_indices = @transform_0, window_bounds = array<i64: 8, 2>}, {transform_indices = @transform_1, window_bounds = array<i64: 8, 32>}, {pipeline_mode = #tpu.pipeline_mode<synchronous>, transform_indices = @transform_2, window_bounds = array<i64: 24, 32>}, {pipeline_mode = #tpu.pipeline_mode<synchronous>, transform_indices = @transform_3, window_bounds = array<i64: 24, 32>}, {transform_indices = @transform_4, window_bounds = array<i64: 8, 32>}]} {
    %c0 = arith.constant 0 : index
    %c0_0 = arith.constant 0 : index
    %0 = vector.load %arg1[%c0, %c0_0] : memref<8x2xi32, #tpu.memory_space<vmem>>, vector<8x2xi32>
    %1 = vector.extract_strided_slice %0 {offsets = [0, 0], sizes = [8, 1], strides = [1, 1]} : vector<8x2xi32> to vector<8x1xi32>
    %c7_i32 = arith.constant 7 : i32
    %2 = vector.broadcast %c7_i32 : i32 to vector<8x1xi32>
    %3 = arith.minsi %1, %2 : vector<8x1xi32>
    %4 = vector.extract_strided_slice %0 {offsets = [0, 1], sizes = [8, 1], strides = [1, 1]} : vector<8x2xi32> to vector<8x1xi32>
    %c7_i32_1 = arith.constant 7 : i32
    %5 = vector.broadcast %c7_i32_1 : i32 to vector<8x1xi32>
    %6 = arith.minsi %4, %5 : vector<8x1xi32>
    %7 = tpu.iota {dimensions = array<i32: 1>} : vector<8x24xi32>
    %8 = tpu.iota {dimensions = array<i32: 1>} : vector<8x24xi32>
    %c8_i32 = arith.constant 8 : i32
    %c0_i32 = arith.constant 0 : i32
    %9 = arith.cmpi eq, %c8_i32, %c0_i32 : i32
    %c1_i32 = arith.constant 1 : i32
    %10 = arith.select %9, %c1_i32, %c8_i32 : i32
    %11 = vector.broadcast %10 : i32 to vector<8x24xi32>
    %12 = arith.remsi %7, %11 : vector<8x24xi32>
    %c0_i32_2 = arith.constant 0 : i32
    %13 = vector.broadcast %c0_i32_2 : i32 to vector<8x24xi32>
    %14 = arith.cmpi ne, %12, %13 : vector<8x24xi32>
    %c0_i32_3 = arith.constant 0 : i32
    %15 = vector.broadcast %c0_i32_3 : i32 to vector<8x24xi32>
    %16 = arith.cmpi slt, %12, %15 : vector<8x24xi32>
    %c0_i32_4 = arith.constant 0 : i32
    %17 = arith.cmpi slt, %10, %c0_i32_4 : i32
    %18 = vector.broadcast %17 : i1 to vector<8x24xi1>
    %19 = vector.broadcast %18 : vector<8x24xi1> to vector<8x24xi1>
    %20 = arith.xori %16, %19 : vector<8x24xi1>
    %21 = arith.andi %20, %14 : vector<8x24xi1>
    %22 = vector.broadcast %10 : i32 to vector<8x24xi32>
    %23 = arith.addi %12, %22 : vector<8x24xi32>
    %24 = arith.select %21, %23, %12 : vector<8x24xi1>, vector<8x24xi32>
    %25 = vector.broadcast %3 : vector<8x1xi32> to vector<8x24xi32>
    %26 = arith.cmpi eq, %24, %25 : vector<8x24xi32>
    %27 = arith.extui %26 : vector<8x24xi1> to vector<8x24xi32>
    %28 = arith.sitofp %27 : vector<8x24xi32> to vector<8x24xf32>
    %29 = arith.truncf %28 : vector<8x24xf32> to vector<8x24xbf16>
    %c8_i32_5 = arith.constant 8 : i32
    %c0_i32_6 = arith.constant 0 : i32
    %30 = arith.cmpi eq, %c8_i32_5, %c0_i32_6 : i32
    %c1_i32_7 = arith.constant 1 : i32
    %31 = arith.select %30, %c1_i32_7, %c8_i32_5 : i32
    %32 = vector.broadcast %31 : i32 to vector<8x24xi32>
    %33 = arith.remsi %8, %32 : vector<8x24xi32>
    %c0_i32_8 = arith.constant 0 : i32
    %34 = vector.broadcast %c0_i32_8 : i32 to vector<8x24xi32>
    %35 = arith.cmpi ne, %33, %34 : vector<8x24xi32>
    %c0_i32_9 = arith.constant 0 : i32
    %36 = vector.broadcast %c0_i32_9 : i32 to vector<8x24xi32>
    %37 = arith.cmpi slt, %33, %36 : vector<8x24xi32>
    %c0_i32_10 = arith.constant 0 : i32
    %38 = arith.cmpi slt, %31, %c0_i32_10 : i32
    %39 = vector.broadcast %38 : i1 to vector<8x24xi1>
    %40 = vector.broadcast %39 : vector<8x24xi1> to vector<8x24xi1>
    %41 = arith.xori %37, %40 : vector<8x24xi1>
    %42 = arith.andi %41, %35 : vector<8x24xi1>
    %43 = vector.broadcast %31 : i32 to vector<8x24xi32>
    %44 = arith.addi %33, %43 : vector<8x24xi32>
    %45 = arith.select %42, %44, %33 : vector<8x24xi1>, vector<8x24xi32>
    %46 = vector.broadcast %6 : vector<8x1xi32> to vector<8x24xi32>
    %47 = arith.cmpi eq, %45, %46 : vector<8x24xi32>
    %48 = arith.extui %47 : vector<8x24xi1> to vector<8x24xi32>
    %49 = arith.sitofp %48 : vector<8x24xi32> to vector<8x24xf32>
    %50 = arith.truncf %49 : vector<8x24xf32> to vector<8x24xbf16>
    %c0_11 = arith.constant 0 : index
    %c0_12 = arith.constant 0 : index
    %51 = vector.load %arg3[%c0_11, %c0_12] : memref<24x32xbf16, #tpu.memory_space<vmem>>, vector<24x32xbf16>
    %cst = arith.constant dense<0.000000e+00> : vector<8x32xf32>
    %52 = tpu.matmul %29, %51, %cst {dimension_numbers = #tpu.dot_dimension_numbers<[1], [0], [0], [1], [0, 0, 1, 1], [], []>} : vector<8x24xbf16>, vector<24x32xbf16>, vector<8x32xf32> -> vector<8x32xf32>
    %c0_13 = arith.constant 0 : index
    %c0_14 = arith.constant 0 : index
    %53 = vector.load %arg4[%c0_13, %c0_14] : memref<24x32xbf16, #tpu.memory_space<vmem>>, vector<24x32xbf16>
    %cst_15 = arith.constant dense<0.000000e+00> : vector<8x32xf32>
    %54 = tpu.matmul %50, %53, %cst_15 {dimension_numbers = #tpu.dot_dimension_numbers<[1], [0], [0], [1], [0, 0, 1, 1], [], []>} : vector<8x24xbf16>, vector<24x32xbf16>, vector<8x32xf32> -> vector<8x32xf32>
    %55 = arith.addf %52, %54 : vector<8x32xf32>
    %c0_16 = arith.constant 0 : index
    %c0_17 = arith.constant 0 : index
    %56 = vector.load %arg2[%c0_16, %c0_17] : memref<8x32xf32, #tpu.memory_space<vmem>>, vector<8x32xf32>
    %57 = arith.addf %56, %55 : vector<8x32xf32>
    %c0_18 = arith.constant 0 : index
    %c0_19 = arith.constant 0 : index
    %58 = vector.load %arg5[%c0_18, %c0_19] : memref<8x32xf32, #tpu.memory_space<vmem>>, vector<8x32xf32>
    tpu.vector_store %arg5[%c0_18, %c0_19], %57 {strides = array<i32>} : memref<8x32xf32, #tpu.memory_space<vmem>>, vector<8x32xf32>,
    return
  }
  func.func @transform_0(%arg0: i32) -> (i32, i32) {
    %c0_i32 = arith.constant 0 : i32
    %c0_i32_0 = arith.constant 0 : i32
    return %arg0, %c0_i32 : i32, i32
  }
  func.func @transform_1(%arg0: i32) -> (i32, i32) {
    %c0_i32 = arith.constant 0 : i32
    %c0_i32_0 = arith.constant 0 : i32
    return %arg0, %c0_i32 : i32, i32
  }
  func.func @transform_2(%arg0: i32) -> (i32, i32) {
    %c0_i32 = arith.constant 0 : i32
    %c0_i32_0 = arith.constant 0 : i32
    %c0_i32_1 = arith.constant 0 : i32
    return %c0_i32, %c0_i32_0 : i32, i32
  }
  func.func @transform_3(%arg0: i32) -> (i32, i32) {
    %c0_i32 = arith.constant 0 : i32
    %c0_i32_0 = arith.constant 0 : i32
    %c0_i32_1 = arith.constant 0 : i32
    return %c0_i32, %c0_i32_0 : i32, i32
  }
  func.func @transform_4(%arg0: i32) -> (i32, i32) {
    %c0_i32 = arith.constant 0 : i32
    %c0_i32_0 = arith.constant 0 : i32
    return %arg0, %c0_i32 : i32, i32
  }
}

</mosaic_0001>

<bundles_post_ra>
// kernel: tpu_custom_call.1
= control target key start
LH: loop header
LB: loop body
LE: loop exit
PB: predicated region body
PF: predicated region fallthrough
CT: control target
= control target key end

     0   :  { %9 = vsyncpa [#allocation3], 0  ;;  %s319_s0 = inlined_call_operand.vmem [shape: s32[8,2], index: 0, kind: input, shape index: {}]   ;;  %s320_s1 = inlined_call_operand.hbm [shape: f32[8,32], index: 1, kind: input, shape index: {}]   ;;  %s321_s2 = inlined_call_operand.hbm [shape: bf16[24,32], index: 2, kind: input, shape index: {}]   ;;  %s322_s3 = inlined_call_operand.vmem [shape: bf16[24,32], index: 3, kind: input, shape index: {}]   ;;  %s323_s4 = inlined_call_operand.hbm [shape: f32[8,32], index: 4, kind: output, shape index: {}]  }
   0x1   :  { %10 = vsyncpa [#allocation6], 0 }
   0x2   :  { %11 = vsyncpa [#allocation4], 0  ;;  %s19_s17 = sshll.u32 %s320_s1, 4  ;;  %s268_s18 = smov [#allocation2]   ;;  %s20_s17 = int_to_ptr.hbm [resolvable:$true] %s19_s17 }
   0x3   :  { %s21_s19 = sshll.u32 %s268_s18, 4  ;;  %s29_s22 = sshll.u32 %s321_s2, 4  ;;  %s22_s19 = int_to_ptr.vmem [resolvable:$true] %s21_s19  ;;  %s30_s22 = int_to_ptr.hbm [resolvable:$true] %s29_s22 }
   0x4   :  { %24 = dma.hbm_to_vmem [thread:$0]  %s20_s17, 128, %s22_s19, [#allocation3]  }
   0x5   :  { %s269_s23 = smov [#allocation5]   ;;  %s270_s25 = smov 64  }
   0x6   :  { %s31_s24 = sshll.u32 %s269_s23, 4  ;;  %s271_s26 = smov 4   ;;  %s32_s24 = int_to_ptr.vmem [resolvable:$true] %s31_s24 }
   0x7   :  { %37 = dma.hbm_to_vmem [thread:$0]  %s30_s22, 192, %s32_s24, [#allocation6], %s270_s25, %s270_s25, %s271_s26  }
   0x8   :  { %262 = dma.done.wait [#allocation3], 128  }
   0x9   :  { %263 = vsyncadd [#allocation3], 4294967168 }
   0xa   :  { %264 = dma.done.wait [#allocation6], 192  }
   0xb   :  { %265 = vsyncadd [#allocation6], 4294967104  ;;  %v272_v0 = vmov 0   ;;  %v49_v1 = vld [vmem:[%s319_s0] sm:$0xff]  ;;  %v82_v2 = vld [vmem:[#allocation5 + $0x8] sm:$0xf]  ;;  %v52_v14 = vlaneseq }
   0xc   :  { %188 = vset.pattern.permute.xlu0 %v272_v0  ;;  %vm50_vm0 = vcmp.lt.s32.totalorder %v49_v1, 7  ;;  %v121_v3 = vunpack.c.l.b16 %v82_v2  ;;  %vm99_vm1 = vcmask 1043456   ;;  %v273_v7 = vmov 1   ;;  %v178_v8 = vld [vmem:[#allocation5] sm:$0xff]  ;;  %v179_v13 = vld [vmem:[%s322_s3] sm:$0xff]  ;;  %s155_s7 = sshll.u32 %s323_s4, 4  ;;  %s156_s7 = int_to_ptr.hbm [resolvable:$true] %s155_s7 }
   0xd   :  { %v51_v4 = vsel %vm50_vm0, %v49_v1, 7  ;;  %v85_v9 = vld [vmem:[%s322_s3 + $0x8] sm:$0xf]  ;;  %v53_v15 = vand.u32 127, %v52_v14  ;;  %v274_v18 = vmov 0.0   ;;  %vm95_vm3 = vcmask 195584  }
   0xe   :  { %67 = vperm.xlu0 %188, %v51_v4   ;;  %v123_v5 = vpack.c.b16 %v121_v3, %v121_v3  ;;  %v91_v10 = vunpack.c.l.b16 %v85_v9  ;;  %v144_v27 = vld [vmem:[#allocation2] sm:$0xff]  ;;  %s275_s3 = smov [#allocation7]   ;;  %vm146_vm5 = vcmask 261120  }
   0xf   :  { %v58_v16 = vand.u32 7, %v53_v15  ;;  %s153_s30 = sshll.u32 %s275_s3, 4  ;;  %s154_s30 = int_to_ptr.vmem [resolvable:$true] %s153_s30 }
  0x10   :  { %v129_v6 = vsel %vm99_vm1, %v123_v5, 0  ;;  %v93_v11 = vpack.c.b16 %v91_v10, %v91_v10 }
  0x11   :  { %137 = vmatpush.bf16.msra.mxu1 %v129_v6 }
  0x12   :  { %v101_v12 = vsel %vm99_vm1, %v93_v11, 0 }
  0x13   :  { %109 = vmatpush.bf16.msra.mxu0 %v101_v12 }
  0x15   :  { %138 = vmatpush.bf16.msra.mxu1 %v178_v8 }
  0x16   :  { %189 = vset.pattern.permute.xlu0 %v273_v7 }
  0x17   :  { %74 = vperm.xlu0 %189, %v51_v4   ;;  %110 = vmatpush.bf16.msra.mxu0 %v179_v13 }
  0x80   :  { %v68_v17 = vpop.permute.xlu0 %67 }
  0x81   :  { %vm69_vm2 = vcmp.eq.s32.totalorder %v58_v16, %v68_v17 }
  0x82   :  { %v166_v19 = vsel %vm69_vm2, 1.0, %v274_v18 }
  0x83   :  { %v72_v20 = vpack.c.bf16 %v166_v19, %v166_v19 }
  0x85   :  { %177 = vmatmul.msk.bf16.vlgmr.msra.gmra.mxu1 %vm95_vm3, %v72_v20 }
  0x89   :  { %v75_v21 = vpop.permute.xlu0 %74 }
  0x8a   :  { %vm76_vm4 = vcmp.eq.s32.totalorder %v58_v16, %v75_v21 }
  0x8b   :  { %v167_v22 = vsel %vm76_vm4, 1.0, %v274_v18 }
  0x8c   :  { %v79_v23 = vpack.c.bf16 %v167_v22, %v167_v22 }
  0x8e   :  { %172 = vmatmul.msk.bf16.vlgmr.msra.gmra.mxu0 %vm95_vm3, %v79_v23 }
 0x102   :  { %v140_v24 = vpop.f32.mrf.mxu1 }
 0x10a   :  { %v142_v25 = vpop.f32.mrf.mxu1 }
 0x10b   :  { %v112_v26 = vpop.f32.mrf.mxu0 }
 0x10c   :  { %v141_v28 = vadd.f32 %v140_v24, %v112_v26 }
 0x10e   :  { %v145_v29 = vadd.f32 %v144_v27, %v141_v28 }
 0x110   :  { %147 = vst.msk [vmem:[#allocation7] sm:$0xff] %vm146_vm5, %v145_v29 }
 0x111   :  { %158 = dma.vmem_to_hbm [thread:$0]  %s154_s30, 128, %s156_s7, [#allocation4]  }
 0x113   :  { %v114_v30 = vpop.f32.mrf.mxu0 }
 0x114   :  { %266 = dma.done.wait [#allocation4], 128  }
 0x115   :  { %267 = vsyncadd [#allocation4], 4294967168 }
 0x116   :  { %163 = vsyncpa [#allocation3], 1 }
 0x117   :  { %164 = vsyncpa [#allocation6], 1 }
 0x118   :  { %165 = vsyncpa [#allocation4], 1 }

</bundles_post_ra>
